<compile_context>
chip_gen: v7x
topology: tpu7x:2x2x1
jax: 0.10.0
libtpu: 0.0.40
codegen_flags: <defaults>
</compile_context>

<pallas_src>
import functools

import numpy as np
import jax
import jax.numpy as jnp
from jax.experimental import pallas as pl
from jax.experimental.pallas import tpu as pltpu


# ----------------------------------------------------------------------------- kernel
def _up_loss_kernel(scores_ref, lab_ref, grp_ref, out_ref, *, num_classes, alpha):
    x = scores_ref[...]                          # [N, C] f32  (full proposal set)
    lab = lab_ref[...]                           # [N, 1] i32  gt label column
    grp = grp_ref[...]                           # [N, 1] i32  0=unused, 1=fg sample, 2=bg sample
    N, C = x.shape
    nc = num_classes

    col = jax.lax.broadcasted_iota(jnp.int32, (N, C), 1)
    is_fg = grp == 1
    valid = grp > 0                              # [N, 1]

    # Masked-space target position (nc-2 for fg rows, nc-1 for bg rows) mapped back
    # to the original column index (the gt column is the one removed per row).
    q = jnp.where(is_fg, jnp.int32(nc - 2), jnp.int32(nc - 1))
    tgt = jnp.where(q < lab, q, q + 1)           # [N, 1]

    is_gt = col == lab                           # [N, C]
    is_tgt = col == tgt                          # [N, C]

    # One exponential pass; non-gt sum accumulated directly (no sum_all - gt_e
    # cancellation), sum_all rebuilt as gt_e + rest_e.
    m_all = jnp.max(x, axis=1, keepdims=True)
    e = jnp.exp(x - m_all)
    gt_e = jnp.sum(jnp.where(is_gt, e, 0.0), axis=1, keepdims=True)
    rest_e = jnp.sum(jnp.where(is_gt, 0.0, e), axis=1, keepdims=True)
    sum_all = gt_e + rest_e

    # gt softmax prob (gt_scores[gt_scores < 0] = 0 in the reference is a no-op for
    # softmax, jnp.maximum kept for parity).  EUP approx reciprocal.
    p = jnp.maximum(gt_e * pl.reciprocal(sum_all, approx=True), 0.0)

    # log_softmax of the gt-masked row evaluated at the target column.
    lse_m = m_all + jnp.log(jnp.maximum(rest_e, jnp.float32(1e-30)))   # underflow guard only
    tgt_logit = jnp.sum(jnp.where(is_tgt, x, 0.0), axis=1, keepdims=True)
    logprob_tgt = tgt_logit - lse_m

    # Focal-style weight; integer alpha lowered as repeated multiply (no EUP pow).
    one_minus = 1.0 - p
    a = float(alpha)
    if a == round(a) and 0.0 <= a <= 4.0:
        w = jnp.ones_like(one_minus)
        for _ in range(int(round(a))):
            w = w * one_minus
    else:
        w = one_minus ** jnp.float32(a)

    contrib = jnp.where(valid, (p * w) * logprob_tgt, 0.0)             # [N, 1]

    # Denominator = number of sampled rows (fg + bg); guard num_fg == 0 -> loss 0.
    cnt = jnp.sum(jnp.where(valid, 1.0, 0.0), axis=0, keepdims=True)   # (1, 1)
    denom = jnp.maximum(cnt, 1.0)
    total = jnp.sum(contrib, axis=0, keepdims=True)                    # (1, 1)
    out_ref[...] = -total * pl.reciprocal(denom, approx=True)


def _up_loss_pallas(scores, labels, group, *, num_classes, alpha):
    N, C = scores.shape
    kernel = functools.partial(_up_loss_kernel, num_classes=num_classes, alpha=float(alpha))
    out = pl.pallas_call(
        kernel,
        out_shape=jax.ShapeDtypeStruct((1, 1), jnp.float32),
        grid=(1,),
        in_specs=[
            pl.BlockSpec((N, C), lambda i: (0, 0)),
            pl.BlockSpec((N, 1), lambda i: (0, 0)),
            pl.BlockSpec((N, 1), lambda i: (0, 0)),
        ],
        out_specs=pl.BlockSpec((1, 1), lambda i: (0, 0)),
        compiler_params=pltpu.CompilerParams(dimension_semantics=("arbitrary",)),
        cost_estimate=pl.CostEstimate(
            flops=12 * N * C,
            transcendentals=N * (C + 3),
            bytes_accessed=4 * (N * C + 2 * N + 1),
        ),
    )(scores, labels, group)
    return out[0, 0]


# ----------------------------------------------------------------------------- device-side forward
def _up_loss_forward(scores, labels, rng_key, *, num_classes, sampling_metric, topk, alpha):
    """Full forward (sampling + loss) on device.  Traced/compiled once per input shape."""
    scores = scores.astype(jnp.float32)
    labels = labels.astype(jnp.int32)
    N, C = scores.shape
    nc = num_classes
    max_k = N if topk == -1 else min(int(topk), N)           # static selection cap

    fg_mask = labels != nc
    num_fg = jnp.sum(fg_mask.astype(jnp.int32))
    num_bg = jnp.int32(N) - num_fg
    k_fg = jnp.minimum(num_fg, jnp.int32(max_k))              # PyTorch: topk = min(num_fg, topk)
    # PyTorch would raise if num_bg < topk; clamp instead so fg rows never leak into
    # the background sample set (fixes the reviewed edge case).
    k_bg = jnp.minimum(num_bg, k_fg)

    # Per-row sampling metric over columns {0..nc-2, nc} (drop the 'unknown' column nc-1),
    # matching torch.cat([scores[:, :nc-1], scores[:, -1:]], dim=1).
    sub = jnp.concatenate([scores[:, :nc - 1], scores[:, -1:]], axis=1)
    if sampling_metric == 'max_entropy':
        logp = jax.nn.log_softmax(sub, axis=1)
        metric = -jnp.sum(jnp.exp(logp) * logp, axis=1)
    elif sampling_metric == 'min_score':
        metric = -jnp.max(sub, axis=1)
    else:  # 'random'
        # TODO(synk): torch.rand uses torch's global RNG; a caller-supplied JAX key is used instead.
        metric = jax.random.uniform(rng_key, (N,), dtype=jnp.float32)

    neg_inf = jnp.float32(-jnp.inf)
    _, pos_idx = jax.lax.top_k(jnp.where(fg_mask, metric, neg_inf), max_k)
    _, neg_idx = jax.lax.top_k(jnp.where(fg_mask, neg_inf, metric), max_k)

    # Per-row membership mask instead of gather/concat/pad of selected rows.
    slot = jnp.arange(max_k, dtype=jnp.int32)
    fg_sel = jnp.zeros((N,), jnp.int32).at[pos_idx].set((slot < k_fg).astype(jnp.int32))
    bg_sel = jnp.zeros((N,), jnp.int32).at[neg_idx].set((slot < k_bg).astype(jnp.int32))
    group = (fg_sel + 2 * bg_sel).astype(jnp.int32)           # disjoint -> values in {0,1,2}

    loss = _up_loss_pallas(scores, labels.reshape(N, 1), group.reshape(N, 1),
                           num_classes=nc, alpha=alpha)
    return loss, group


# ----------------------------------------------------------------------------- module
class UPLossPallas:
    """JAX/Pallas port of mmdet OpenDet UPLoss (forward only)."""

    def __init__(self, num_classes, up_loss_start_iter, up_loss_sampling_metric,
                 up_loss_topk, up_loss_alpha, up_loss_weight):
        assert up_loss_sampling_metric in ['min_score', 'max_entropy', 'random']
        self.num_classes = num_classes
        self.up_loss_start_iter = up_loss_start_iter          # not used in forward
        self.up_loss_sampling_metric = up_loss_sampling_metric
        self.up_loss_topk = up_loss_topk
        self.up_loss_alpha = up_loss_alpha
        self.up_loss_weight = up_loss_weight                  # not applied in forward

        # Config is baked in before jit -> the preamble and pallas_call are compiled
        # exactly once per input shape, then reused.
        self._jitted = jax.jit(functools.partial(
            _up_loss_forward,
            num_classes=num_classes,
            sampling_metric=up_loss_sampling_metric,
            topk=up_loss_topk,
            alpha=up_loss_alpha))

    def __call__(self, scores, labels, rng_key=None):
        if rng_key is None:
            rng_key = jax.random.PRNGKey(0)
        loss, _ = self._jitted(scores, labels, rng_key)
        return loss

    def forward_with_aux(self, scores, labels, rng_key=None):
        if rng_key is None:
            rng_key = jax.random.PRNGKey(0)
        return self._jitted(scores, labels, rng_key)


# ----------------------------------------------------------------------------- reference
def _reference_loss(s, l, num_fg, num_classes, alpha):
    """Numpy replica of the PyTorch forward (post-sampling) for verification."""
    s = s.astype(np.float32)
    S, C = s.shape
    mask = np.tile(np.arange(C), (S, 1))
    inds = mask != l[:, None]
    mask = mask[inds].reshape(S, C - 1)
    ex = np.exp(s - s.max(1, keepdims=True))
    sm = ex / ex.sum(1, keepdims=True)
    gt = np.maximum(sm[np.arange(S), l], 0.0)
    mask_scores = np.take_along_axis(s, mask, axis=1)
    targets = np.zeros_like(mask_scores)
    targets[:num_fg, num_classes - 2] = gt[:num_fg] * (1 - gt[:num_fg]) ** alpha
    targets[num_fg:, num_classes - 1] = gt[num_fg:] * (1 - gt[num_fg:]) ** alpha
    lp = mask_scores - mask_scores.max(1, keepdims=True)
    lp = lp - np.log(np.exp(lp).sum(1, keepdims=True))
    return -(targets * lp).sum() / S


# ----------------------------------------------------------------------------- main
if __name__ == "__main__":
    num_classes = 10          # known classes (incl. "unknown") -> scores have 11 cols
    N, C = 32, num_classes + 1

    key = jax.random.PRNGKey(0)
    scores = jax.random.normal(key, (N, C), dtype=jnp.float32)
    # deterministic labels: every 3rd proposal is foreground (class 0..8), rest background
    idx = np.arange(N)
    labels_np = np.where(idx % 3 == 0, idx % (num_classes - 1), num_classes).astype(np.int32)
    labels = jnp.asarray(labels_np)

    loss_mod = UPLossPallas(
        num_classes=num_classes,
        up_loss_start_iter=100,
        up_loss_sampling_metric='min_score',
        up_loss_topk=3,
        up_loss_alpha=1.0,
        up_loss_weight=0.5,
    )

    loss, group = loss_mod.forward_with_aux(scores, labels)
    loss = jax.block_until_ready(loss)

    # Reference built from the rows the membership mask selected (order-independent).
    group_np = np.asarray(group)
    s_np = np.asarray(scores, dtype=np.float32)
    fg_rows = np.where(group_np == 1)[0]
    bg_rows = np.where(group_np == 2)[0]
    assert len(fg_rows) == min(3, int((labels_np != num_classes).sum())), (len(fg_rows),)
    assert len(bg_rows) == len(fg_rows), (len(bg_rows), len(fg_rows))
    s_sel = np.concatenate([s_np[fg_rows], s_np[bg_rows]], axis=0)
    l_sel = np.concatenate([labels_np[fg_rows], labels_np[bg_rows]], axis=0)
    ref = _reference_loss(s_sel, l_sel, len(fg_rows), num_classes, loss_mod.up_loss_alpha)

    assert np.isfinite(np.float32(loss)), loss
    # Tolerance accounts for the EUP approximate reciprocals used inside the kernel.
    assert np.allclose(np.float32(loss), np.float32(ref), rtol=2e-2, atol=1e-4), (float(loss), ref)

    # Second call hits the cached jit / pallas executable (same shapes -> no retrace).
    loss2 = jax.block_until_ready(loss_mod(scores, labels))
    assert np.allclose(np.float32(loss), np.float32(loss2), rtol=1e-6, atol=1e-7)

    print("KERNEL_OK")
</pallas_src>

<mosaic_0001>
module attributes {stable_mosaic.version = 11 : i64} {
  func.func @_up_loss_kernel(%arg0: i32, %arg1: memref<32x11xf32, #tpu.memory_space<vmem>>, %arg2: memref<32x1xi32, #tpu.memory_space<vmem>>, %arg3: memref<32x1xi32, #tpu.memory_space<vmem>>, %arg4: memref<1x1xf32, #tpu.memory_space<vmem>>) attributes {dimension_semantics = [#tpu.dimension_semantics<arbitrary>], iteration_bounds = array<i64: 1>, scalar_prefetch = 0 : i64, scratch_operands = 0 : i64, tpu.core_type = #tpu.core_type<tc>, window_params = [{pipeline_mode = #tpu.pipeline_mode<synchronous>, transform_indices = @transform_0, window_bounds = array<i64: 32, 11>}, {pipeline_mode = #tpu.pipeline_mode<synchronous>, transform_indices = @transform_1, window_bounds = array<i64: 32, 1>}, {pipeline_mode = #tpu.pipeline_mode<synchronous>, transform_indices = @transform_2, window_bounds = array<i64: 32, 1>}, {pipeline_mode = #tpu.pipeline_mode<synchronous>, transform_indices = @transform_3, window_bounds = array<i64: 1, 1>}]} {
    %c0 = arith.constant 0 : index
    %c0_0 = arith.constant 0 : index
    %0 = vector.load %arg1[%c0, %c0_0] : memref<32x11xf32, #tpu.memory_space<vmem>>, vector<32x11xf32>
    %c0_1 = arith.constant 0 : index
    %c0_2 = arith.constant 0 : index
    %1 = vector.load %arg2[%c0_1, %c0_2] : memref<32x1xi32, #tpu.memory_space<vmem>>, vector<32x1xi32>
    %c0_3 = arith.constant 0 : index
    %c0_4 = arith.constant 0 : index
    %2 = vector.load %arg3[%c0_3, %c0_4] : memref<32x1xi32, #tpu.memory_space<vmem>>, vector<32x1xi32>
    %3 = tpu.iota {dimensions = array<i32: 1>} : vector<32x11xi32>
    %c1_i32 = arith.constant 1 : i32
    %4 = vector.broadcast %c1_i32 : i32 to vector<32x1xi32>
    %5 = arith.cmpi eq, %2, %4 : vector<32x1xi32>
    %c0_i32 = arith.constant 0 : i32
    %6 = vector.broadcast %c0_i32 : i32 to vector<32x1xi32>
    %7 = arith.cmpi sgt, %2, %6 : vector<32x1xi32>
    %c8_i32 = arith.constant 8 : i32
    %c9_i32 = arith.constant 9 : i32
    %8 = vector.broadcast %c8_i32 : i32 to vector<32x1xi32>
    %9 = vector.broadcast %c9_i32 : i32 to vector<32x1xi32>
    %10 = arith.select %5, %8, %9 : vector<32x1xi1>, vector<32x1xi32>
    %11 = arith.cmpi slt, %10, %1 : vector<32x1xi32>
    %c1_i32_5 = arith.constant 1 : i32
    %12 = vector.broadcast %c1_i32_5 : i32 to vector<32x1xi32>
    %13 = arith.addi %10, %12 : vector<32x1xi32>
    %14 = arith.select %11, %10, %13 : vector<32x1xi1>, vector<32x1xi32>
    %15 = vector.broadcast %1 : vector<32x1xi32> to vector<32x11xi32>
    %16 = arith.cmpi eq, %3, %15 : vector<32x11xi32>
    %17 = vector.broadcast %14 : vector<32x1xi32> to vector<32x11xi32>
    %18 = arith.cmpi eq, %3, %17 : vector<32x11xi32>
    %cst = arith.constant dense<0xFF800000> : vector<32xf32>
    %19 = vector.multi_reduction <maximumf>, %0, %cst [1] : vector<32x11xf32> to vector<32xf32>
    %20 = vector.shape_cast %19 : vector<32xf32> to vector<32x1xf32>
    %21 = vector.broadcast %20 : vector<32x1xf32> to vector<32x11xf32>
    %22 = arith.subf %0, %21 : vector<32x11xf32>
    %23 = math.exp %22 : vector<32x11xf32>
    %cst_6 = arith.constant 0.000000e+00 : f32
    %24 = vector.broadcast %cst_6 : f32 to vector<32x11xf32>
    %25 = arith.select %16, %23, %24 : vector<32x11xi1>, vector<32x11xf32>
    %cst_7 = arith.constant dense<0.000000e+00> : vector<32xf32>
    %26 = vector.multi_reduction <add>, %25, %cst_7 [1] : vector<32x11xf32> to vector<32xf32>
    %27 = vector.shape_cast %26 : vector<32xf32> to vector<32x1xf32>
    %cst_8 = arith.constant 0.000000e+00 : f32
    %28 = vector.broadcast %cst_8 : f32 to vector<32x11xf32>
    %29 = arith.select %16, %28, %23 : vector<32x11xi1>, vector<32x11xf32>
    %cst_9 = arith.constant dense<0.000000e+00> : vector<32xf32>
    %30 = vector.multi_reduction <add>, %29, %cst_9 [1] : vector<32x11xf32> to vector<32xf32>
    %31 = vector.shape_cast %30 : vector<32xf32> to vector<32x1xf32>
    %32 = arith.addf %27, %31 : vector<32x1xf32>
    %33 = tpu.reciprocal %32 {approx = true} : vector<32x1xf32> -> vector<32x1xf32>
    %34 = arith.mulf %27, %33 : vector<32x1xf32>
    %cst_10 = arith.constant 0.000000e+00 : f32
    %35 = vector.broadcast %cst_10 : f32 to vector<32x1xf32>
    %36 = arith.maximumf %34, %35 : vector<32x1xf32>
    %cst_11 = arith.constant 1.000000e-30 : f32
    %37 = vector.broadcast %cst_11 : f32 to vector<32x1xf32>
    %38 = arith.maximumf %31, %37 : vector<32x1xf32>
    %39 = math.log %38 : vector<32x1xf32>
    %40 = arith.addf %20, %39 : vector<32x1xf32>
    %cst_12 = arith.constant 0.000000e+00 : f32
    %41 = vector.broadcast %cst_12 : f32 to vector<32x11xf32>
    %42 = arith.select %18, %0, %41 : vector<32x11xi1>, vector<32x11xf32>
    %cst_13 = arith.constant dense<0.000000e+00> : vector<32xf32>
    %43 = vector.multi_reduction <add>, %42, %cst_13 [1] : vector<32x11xf32> to vector<32xf32>
    %44 = vector.shape_cast %43 : vector<32xf32> to vector<32x1xf32>
    %45 = arith.subf %44, %40 : vector<32x1xf32>
    %cst_14 = arith.constant 1.000000e+00 : f32
    %46 = vector.broadcast %cst_14 : f32 to vector<32x1xf32>
    %47 = arith.subf %46, %36 : vector<32x1xf32>
    %cst_15 = arith.constant 1.000000e+00 : f32
    %48 = vector.broadcast %cst_15 : f32 to vector<32x1xf32>
    %49 = arith.mulf %48, %47 : vector<32x1xf32>
    %50 = arith.mulf %36, %49 : vector<32x1xf32>
    %51 = arith.mulf %50, %45 : vector<32x1xf32>
    %cst_16 = arith.constant 0.000000e+00 : f32
    %52 = vector.broadcast %cst_16 : f32 to vector<32x1xf32>
    %53 = arith.select %7, %51, %52 : vector<32x1xi1>, vector<32x1xf32>
    %cst_17 = arith.constant 1.000000e+00 : f32
    %cst_18 = arith.constant 0.000000e+00 : f32
    %54 = vector.broadcast %cst_17 : f32 to vector<32x1xf32>
    %55 = vector.broadcast %cst_18 : f32 to vector<32x1xf32>
    %56 = arith.select %7, %54, %55 : vector<32x1xi1>, vector<32x1xf32>
    %cst_19 = arith.constant dense<0.000000e+00> : vector<1xf32>
    %57 = vector.multi_reduction <add>, %56, %cst_19 [0] : vector<32x1xf32> to vector<1xf32>
    %58 = vector.shape_cast %57 : vector<1xf32> to vector<1x1xf32>
    %cst_20 = arith.constant 1.000000e+00 : f32
    %59 = vector.broadcast %cst_20 : f32 to vector<1x1xf32>
    %60 = arith.maximumf %58, %59 : vector<1x1xf32>
    %cst_21 = arith.constant dense<0.000000e+00> : vector<1xf32>
    %61 = vector.multi_reduction <add>, %53, %cst_21 [0] : vector<32x1xf32> to vector<1xf32>
    %62 = vector.shape_cast %61 : vector<1xf32> to vector<1x1xf32>
    %cst_22 = arith.constant 0.000000e+00 : f32
    %63 = vector.broadcast %cst_22 : f32 to vector<1x1xf32>
    %64 = arith.subf %63, %62 : vector<1x1xf32>
    %65 = tpu.reciprocal %60 {approx = true} : vector<1x1xf32> -> vector<1x1xf32>
    %66 = arith.mulf %64, %65 : vector<1x1xf32>
    %c0_23 = arith.constant 0 : index
    %c0_24 = arith.constant 0 : index
    %67 = vector.load %arg4[%c0_23, %c0_24] : memref<1x1xf32, #tpu.memory_space<vmem>>, vector<1x1xf32>
    tpu.vector_store %arg4[%c0_23, %c0_24], %66 {strides = array<i32>} : memref<1x1xf32, #tpu.memory_space<vmem>>, vector<1x1xf32>,
    return
  }
  func.func @transform_0(%arg0: i32) -> (i32, i32) {
    %c0_i32 = arith.constant 0 : i32
    %c0_i32_0 = arith.constant 0 : i32
    %c0_i32_1 = arith.constant 0 : i32
    return %c0_i32, %c0_i32_0 : i32, i32
  }
  func.func @transform_1(%arg0: i32) -> (i32, i32) {
    %c0_i32 = arith.constant 0 : i32
    %c0_i32_0 = arith.constant 0 : i32
    %c0_i32_1 = arith.constant 0 : i32
    return %c0_i32, %c0_i32_0 : i32, i32
  }
  func.func @transform_2(%arg0: i32) -> (i32, i32) {
    %c0_i32 = arith.constant 0 : i32
    %c0_i32_0 = arith.constant 0 : i32
    %c0_i32_1 = arith.constant 0 : i32
    return %c0_i32, %c0_i32_0 : i32, i32
  }
  func.func @transform_3(%arg0: i32) -> (i32, i32) {
    %c0_i32 = arith.constant 0 : i32
    %c0_i32_0 = arith.constant 0 : i32
    %c0_i32_1 = arith.constant 0 : i32
    return %c0_i32, %c0_i32_0 : i32, i32
  }
}

</mosaic_0001>

<bundles_post_ra>
// kernel: _up_loss_forward.1
= control target key start
LH: loop header
LB: loop body
LE: loop exit
PB: predicated region body
PF: predicated region fallthrough
CT: control target
= control target key end

     0   :  { %vm85_vm0 = vcmask 89088   ;;  %v317_v6 = vmov 0   ;;  %s485_s0 = inlined_call_operand.vmem [shape: f32[32,11], index: 0, kind: input, shape index: {}]   ;;  %s486_s1 = inlined_call_operand.vmem [shape: s32[32,1], index: 1, kind: input, shape index: {}]   ;;  %s487_s2 = inlined_call_operand.vmem [shape: s32[32,1], index: 2, kind: input, shape index: {}]   ;;  %s488_s3 = inlined_call_operand.hbm [shape: f32[1,1], index: 3, kind: output, shape index: {}]  }
   0x1   :  { %v344_v0 = vld [vmem:[%s485_s0 + $0x10] sm:$0xff]  ;;  %v349_v1 = vld [vmem:[%s485_s0] sm:$0xff]  ;;  %v354_v2 = vld [vmem:[%s485_s0 + $0x18] sm:$0xff]  ;;  %266 = vset.pattern.permute.xlu1 %v317_v6  ;;  %265 = vset.pattern.permute.xlu0 %v317_v6 }
   0x2   :  { %v92_v3 = vsel %vm85_vm0, %v344_v0, -inf  ;;  %v86_v4 = vsel %vm85_vm0, %v349_v1, -inf  ;;  %v363_v5 = vld [vmem:[%s485_s0 + $0x8] sm:$0xff]  ;;  %v95_v7 = vsel %vm85_vm0, %v354_v2, -inf }
   0x3   :  { %93 = vmax.xlane.f32.xlu1 %v92_v3  ;;  %87 = vmax.xlane.f32.xlu0 %v86_v4  ;;  %v89_v8 = vsel %vm85_vm0, %v363_v5, -inf }
   0x4   :  { %8 = vsyncpa [#allocation3], 0  ;;  %v372_v9 = vld [vmem:[%s487_s2] sm:$0xff]  ;;  %v20_v10 = vld [vmem:[%s486_s1 + $0x8] sm:$0xff]  ;;  %v318_v14 = vmov 9   ;;  %v27_v40 = vlaneseq }
   0x5   :  { %vm29_vm1 = vcmp.eq.s32.totalorder %v372_v9, 1  ;;  %v381_v11 = vld [vmem:[%s487_s2 + $0x8] sm:$0xff]  ;;  %v21_v12 = vld [vmem:[%s486_s1 + $0x10] sm:$0xff]  ;;  %v19_v13 = vld [vmem:[%s486_s1] sm:$0xff] }
   0x6   :  { %v37_v15 = vsel %vm29_vm1, 8, %v318_v14  ;;  %vm30_vm2 = vcmp.eq.s32.totalorder %v381_v11, 1  ;;  %v393_v16 = vld [vmem:[%s487_s2 + $0x10] sm:$0xff]  ;;  %v22_v17 = vld [vmem:[%s486_s1 + $0x18] sm:$0xff]  ;;  %v28_v44 = vand.u32 127, %v27_v40  ;;  %s320_s1 = smov [#allocation2]  }
   0x7   :  { %96 = vmax.xlane.f32.xlu1 %v95_v7  ;;  %90 = vmax.xlane.f32.xlu0 %v89_v8  ;;  %v45_v18 = vadd.s32 1, %v37_v15  ;;  %v38_v19 = vsel %vm30_vm2, 8, %v318_v14  ;;  %vm41_vm3 = vcmp.lt.s32.totalorder %v37_v15, %v19_v13  ;;  %vm31_vm4 = vcmp.eq.s32.totalorder %v393_v16, 1  ;;  %v402_v20 = vld [vmem:[%s487_s2 + $0x18] sm:$0xff]  ;;  %s253_s2 = sshll.u32 %s320_s1, 4  ;;  %s254_s2 = int_to_ptr.vmem [resolvable:$true] %s253_s2 }
   0x8   :  { %v46_v22 = vadd.s32 1, %v38_v19  ;;  %vm42_vm5 = vcmp.lt.s32.totalorder %v38_v19, %v20_v10  ;;  %v39_v23 = vsel %vm31_vm4, 8, %v318_v14  ;;  %vm32_vm6 = vcmp.eq.s32.totalorder %v402_v20, 1  ;;  %s293_s8 = scalar_lea.vmem %s254_s2, 16  ;;  %s297_s9 = scalar_lea.vmem %s254_s2, 32 }
   0x9   :  { %v49_v21 = vsel %vm41_vm3, %v37_v15, %v45_v18  ;;  %v47_v25 = vadd.s32 1, %v39_v23  ;;  %vm43_vm7 = vcmp.lt.s32.totalorder %v39_v23, %v21_v12  ;;  %v40_v26 = vsel %vm32_vm6, 8, %v318_v14  ;;  %p294_p0 = scmp.ne.s32.totalorder %s254_s2, %s293_s8  ;;  %p298_p1 = scmp.lt.s32.totalorder %s254_s2, %s254_s2 }
   0xa   :  { %v50_v24 = vsel %vm42_vm5, %v38_v19, %v46_v22  ;;  %v48_v28 = vadd.s32 1, %v40_v26  ;;  %vm44_vm8 = vcmp.lt.s32.totalorder %v40_v26, %v22_v17  ;;  %vm34_vm2 = vcmp.gt.s32.totalorder %v381_v11, 0  ;;  %p299_p2 = scmp.lt.s32.totalorder %s297_s9, %s293_s8 }
   0xb   :  { %v51_v27 = vsel %vm43_vm7, %v39_v23, %v47_v25  ;;  %vm33_vm3 = vcmp.gt.s32.totalorder %v372_v9, 0  ;;  %v319_v23 = vmov 0.0   ;;  %vm214_vm4 = vcmask 7168  }
   0xc   :  { %v52_v29 = vsel %vm44_vm8, %v40_v26, %v48_v28  ;;  %vm35_vm5 = vcmp.gt.s32.totalorder %v393_v16, 0  ;;  %vm245_vm6 = vcmask 0   ;;  %p300_p3 = por %p299_p2, %p298_p1 }
   0xd   :  { %v212_v26 = vsel %vm35_vm5, 1.0, %v319_v23 }
   0xe   :  { %p301_p4 = pnand %p300_p3, %p294_p0 }
  0x18   :  { %57 = vperm.xlu1 %266, %v20_v10  }
  0x1c   :  { %60 = vperm.xlu1 %266, %v21_v12  }
  0x1d   :  { %54 = vperm.xlu0 %265, %v19_v13  }
  0x20   :  { %63 = vperm.xlu1 %266, %v22_v17  }
  0x24   :  { %70 = vperm.xlu1 %266, %v49_v21  }
  0x28   :  { %73 = vperm.xlu1 %266, %v50_v24  }
  0x2c   :  { %76 = vperm.xlu1 %266, %v51_v27  }
  0x30   :  { %79 = vperm.xlu1 %266, %v52_v29  }
  0x90   :  { %v405_v30 = vpop.xlane.xlu1 %93  ;;  %v407_v31 = vpop.xlane.xlu0 %87 }
  0x91   :  { %v100_v32 = vsub.f32 %v344_v0, %v405_v30  ;;  %v98_v33 = vsub.f32 %v349_v1, %v407_v31 }
  0x93   :  { %v102_v34 = vmul.f32 1.442695, %v98_v33  ;;  %v106_v37 = vmul.f32 1.442695, %v100_v32 }
  0x94   :  { %v413_v35 = vpop.xlane.xlu1 %96  ;;  %v415_v36 = vpop.xlane.xlu0 %90 }
  0x95   :  { %v99_v38 = vsub.f32 %v363_v5, %v415_v36  ;;  %267 = vpow2.f32 %v102_v34  ;;  %v101_v39 = vsub.f32 %v354_v2, %v413_v35  ;;  %v218_v34 = vsel %vm214_vm4, %v212_v26, 0.0 }
  0x96   :  { %269 = vpow2.f32 %v106_v37 }
  0x97   :  { %v104_v41 = vmul.f32 1.442695, %v99_v38  ;;  %v108_v43 = vmul.f32 1.442695, %v101_v39 }
  0x98   :  { %v58_v42 = vpop.permute.xlu1 %57 }
  0x99   :  { %271 = vpow2.f32 %v104_v41  ;;  %vm66_vm10 = vcmp.eq.s32.totalorder %v28_v44, %v58_v42 }
  0x9a   :  { %273 = vpow2.f32 %v108_v43 }
  0x9c   :  { %v61_v45 = vpop.permute.xlu1 %60  ;;  %v55_v46 = vpop.permute.xlu0 %54 }
  0x9d   :  { %vm65_vm9 = vcmp.eq.s32.totalorder %v28_v44, %v55_v46  ;;  %vm67_vm11 = vcmp.eq.s32.totalorder %v28_v44, %v61_v45 }
  0x9f   :  { %v268_v47 = vpop.eup %267 }
  0xa0   :  { %v64_v48 = vpop.permute.xlu1 %63  ;;  %v110_v49 = vsel %vm65_vm9, %v268_v47, 0.0  ;;  %v270_v51 = vpop.eup %269  ;;  %v126_v58 = vsel %vm65_vm9, 0.0, %v268_v47 }
  0xa1   :  { %v114_v50 = vsel %vm85_vm0, %v110_v49, 0.0  ;;  %v128_v59 = vsel %vm67_vm11, 0.0, %v270_v51  ;;  %vm68_vm12 = vcmp.eq.s32.totalorder %v28_v44, %v64_v48  ;;  %v130_v62 = vsel %vm85_vm0, %v126_v58, 0.0 }
  0xa2   :  { %115 = vadd.xlane.f32.xlu1 %v114_v50  ;;  %v136_v63 = vsel %vm85_vm0, %v128_v59, 0.0  ;;  %v112_v3 = vsel %vm67_vm11, %v270_v51, 0.0 }
  0xa3   :  { %v272_v52 = vpop.eup %271  ;;  %v120_v7 = vsel %vm85_vm0, %v112_v3, 0.0 }
  0xa4   :  { %v71_v53 = vpop.permute.xlu1 %70  ;;  %v111_v54 = vsel %vm66_vm10, %v272_v52, 0.0  ;;  %v127_v55 = vsel %vm66_vm10, 0.0, %v272_v52  ;;  %v274_v60 = vpop.eup %273 }
  0xa5   :  { %v117_v56 = vsel %vm85_vm0, %v111_v54, 0.0  ;;  %v133_v57 = vsel %vm85_vm0, %v127_v55, 0.0  ;;  %v129_v4 = vsel %vm68_vm12, 0.0, %v274_v60  ;;  %v113_v10 = vsel %vm68_vm12, %v274_v60, 0.0 }
  0xa6   :  { %118 = vadd.xlane.f32.xlu0 %v117_v56  ;;  %134 = vadd.xlane.f32.xlu1 %v133_v57  ;;  %v139_v8 = vsel %vm85_vm0, %v129_v4, 0.0  ;;  %vm81_vm14 = vcmp.eq.s32.totalorder %v28_v44, %v71_v53  ;;  %v123_v14 = vsel %vm85_vm0, %v113_v10, 0.0 }
  0xa7   :  { %v174_v17 = vsel %vm81_vm14, %v349_v1, 0.0  ;;  %v211_v1 = vsel %vm34_vm2, 1.0, %v319_v23 }
  0xa8   :  { %v74_v61 = vpop.permute.xlu1 %73  ;;  %v178_v19 = vsel %vm85_vm0, %v174_v17, 0.0 }
  0xa9   :  { %vm82_vm13 = vcmp.eq.s32.totalorder %v28_v44, %v74_v61 }
  0xaa   :  { %131 = vadd.xlane.f32.xlu0 %v130_v62  ;;  %137 = vadd.xlane.f32.xlu1 %v136_v63  ;;  %v175_v12 = vsel %vm82_vm13, %v363_v5, 0.0 }
  0xab   :  { %v181_v15 = vsel %vm85_vm0, %v175_v12, 0.0 }
  0xac   :  { %v77_v6 = vpop.permute.xlu1 %76 }
  0xad   :  { %vm83_vm1 = vcmp.eq.s32.totalorder %v28_v44, %v77_v6 }
  0xae   :  { %121 = vadd.xlane.f32.xlu0 %v120_v7  ;;  %140 = vadd.xlane.f32.xlu1 %v139_v8  ;;  %v176_v5 = vsel %vm83_vm1, %v344_v0, 0.0  ;;  %v216_v0 = vsel %vm214_vm4, %v211_v1, 0.0 }
  0xaf   :  { %v184_v22 = vsel %vm85_vm0, %v176_v5, 0.0 }
  0xb0   :  { %v80_v13 = vpop.permute.xlu1 %79 }
  0xb1   :  { %vm84_vm15 = vcmp.eq.s32.totalorder %v28_v44, %v80_v13 }
  0xb2   :  { %124 = vadd.xlane.f32.xlu0 %v123_v14  ;;  %182 = vadd.xlane.f32.xlu1 %v181_v15  ;;  %v177_v18 = vsel %vm84_vm15, %v354_v2, 0.0  ;;  %v210_v2 = vsel %vm33_vm3, 1.0, %v319_v23 }
  0xb3   :  { %v187_v21 = vsel %vm85_vm0, %v177_v18, 0.0  ;;  %v215_v25 = vsel %vm214_vm4, %v210_v2, 0.0  ;;  %vm36_vm0 = vcmp.gt.s32.totalorder %v402_v20, 0 }
  0xb4   :  { %v217_v29 = vadd.f32 %v216_v0, %v215_v25  ;;  %v213_v37 = vsel %vm36_vm0, 1.0, %v319_v23 }
  0xb5   :  { %v220_v44 = vsel %vm214_vm4, %v213_v37, 0.0 }
  0xb6   :  { %179 = vadd.xlane.f32.xlu0 %v178_v19  ;;  %188 = vadd.xlane.f32.xlu1 %v187_v21  ;;  %v219_v40 = vadd.f32 %v218_v34, %v217_v29 }
  0xb8   :  { %v221_v47 = vadd.f32 %v220_v44, %v219_v40 }
  0xba   :  { %185 = vadd.xlane.f32.xlu0 %v184_v22  ;;  %v222_v51 = vrot.slane %v221_v47, 4 }
  0xbc   :  { %v223_v57 = vadd.f32 %v222_v51, %v221_v47 }
  0xbe   :  { %v224_v7 = vrot.slane %v223_v57, 2 }
  0xc0   :  { %v225_v22 = vadd.f32 %v224_v7, %v223_v57 }
  0xc2   :  { %v226_v34 = vrot.slane %v225_v22, 1 }
 0x12f   :  { %v116_v24 = vpop.xlane.xlu1 %115 }
 0x133   :  { %v135_v27 = vpop.xlane.xlu1 %134  ;;  %v119_v28 = vpop.xlane.xlu0 %118 }
 0x134   :  { %v159_v32 = vmax.f32 %v135_v27, 1e-30  ;;  %v143_v33 = vadd.f32 %v135_v27, %v119_v28 }
 0x136   :  { %275 = vlog2.f32 %v159_v32 }
 0x137   :  { %277 = vrcp.f32 %v143_v33  ;;  %v138_v38 = vpop.xlane.xlu1 %137  ;;  %v132_v39 = vpop.xlane.xlu0 %131 }
 0x138   :  { %v160_v41 = vmax.f32 %v138_v38, 1e-30  ;;  %v142_v42 = vadd.f32 %v132_v39, %v116_v24  ;;  %v158_v43 = vmax.f32 %v132_v39, 1e-30 }
 0x13a   :  { %279 = vlog2.f32 %v160_v41 }
 0x13b   :  { %281 = vrcp.f32 %v142_v42  ;;  %v141_v45 = vpop.xlane.xlu1 %140  ;;  %v122_v46 = vpop.xlane.xlu0 %121 }
 0x13c   :  { %283 = vlog2.f32 %v158_v43  ;;  %v161_v48 = vmax.f32 %v141_v45, 1e-30  ;;  %v144_v49 = vadd.f32 %v138_v38, %v122_v46 }
 0x13e   :  { %285 = vlog2.f32 %v161_v48 }
 0x13f   :  { %287 = vrcp.f32 %v144_v49  ;;  %v125_v50 = vpop.xlane.xlu0 %124  ;;  %v183_v18 = vpop.xlane.xlu1 %182 }
 0x140   :  { %v276_v52 = vpop.eup %275  ;;  %v145_v53 = vadd.f32 %v141_v45, %v125_v50  ;;  %v227_v45 = vadd.f32 %v226_v34, %v225_v22 }
 0x141   :  { %v278_v54 = vpop.eup %277  ;;  %v165_v56 = vmul.f32 0.6931472, %v276_v52 }
 0x142   :  { %v151_v55 = vmul.f32 %v278_v54, %v119_v28  ;;  %289 = vrcp.f32 %v145_v53 }
 0x143   :  { %v171_v3 = vadd.f32 %v165_v56, %v415_v36  ;;  %v180_v6 = vpop.xlane.xlu0 %179  ;;  %v189_v40 = vpop.xlane.xlu1 %188 }
 0x144   :  { %v280_v58 = vpop.eup %279  ;;  %v155_v59 = vmax.f32 %v151_v55, 0.0 }
 0x145   :  { %v282_v60 = vpop.eup %281  ;;  %v167_v12 = vmul.f32 0.6931472, %v280_v58  ;;  %v191_v21 = vsub.f32 %v183_v18, %v171_v3 }
 0x146   :  { %v284_v61 = vpop.eup %283  ;;  %v195_v62 = vsub.f32 1.0, %v155_v59  ;;  %v150_v63 = vmul.f32 %v282_v60, %v116_v24 }
 0x147   :  { %v163_v4 = vmul.f32 0.6931472, %v284_v61  ;;  %v172_v24 = vadd.f32 %v167_v12, %v405_v30  ;;  %v186_v26 = vpop.xlane.xlu0 %185 }
 0x148   :  { %v286_v8 = vpop.eup %285  ;;  %v154_v10 = vmax.f32 %v150_v63, 0.0  ;;  %v199_v14 = vmul.f32 %v195_v62, %v155_v59 }
 0x149   :  { %v288_v13 = vpop.eup %287  ;;  %v170_v15 = vadd.f32 %v163_v4, %v407_v31  ;;  %v169_v5 = vmul.f32 0.6931472, %v286_v8  ;;  %v192_v37 = vsub.f32 %v186_v26, %v172_v24 }
 0x14a   :  { %v152_v17 = vmul.f32 %v288_v13, %v122_v46  ;;  %v194_v19 = vsub.f32 1.0, %v154_v10  ;;  %v203_v0 = vmul.f32 %v199_v14, %v191_v21 }
 0x14b   :  { %v190_v36 = vsub.f32 %v180_v6, %v170_v15  ;;  %v173_v31 = vadd.f32 %v169_v5, %v413_v35 }
 0x14c   :  { %v290_v23 = vpop.eup %289  ;;  %v156_v1 = vmax.f32 %v152_v17, 0.0  ;;  %v198_v2 = vmul.f32 %v194_v19, %v154_v10  ;;  %v207_v38 = vsel %vm34_vm2, %v203_v0, 0.0 }
 0x14d   :  { %v153_v25 = vmul.f32 %v290_v23, %v125_v50  ;;  %v193_v43 = vsub.f32 %v189_v40, %v173_v31  ;;  %v230_v44 = vsel %vm214_vm4, %v207_v38, 0.0  ;;  %v228_v50 = vmax.f32 %v227_v45, 1.0 }
 0x14e   :  { %v196_v27 = vsub.f32 1.0, %v156_v1  ;;  %v202_v28 = vmul.f32 %v198_v2, %v190_v36 }
 0x14f   :  { %v157_v29 = vmax.f32 %v153_v25, 0.0  ;;  %291 = vrcp.f32 %v228_v50 }
 0x150   :  { %v200_v32 = vmul.f32 %v196_v27, %v156_v1  ;;  %v206_v33 = vsel %vm33_vm3, %v202_v28, 0.0 }
 0x151   :  { %v197_v39 = vsub.f32 1.0, %v157_v29  ;;  %v229_v30 = vsel %vm214_vm4, %v206_v33, 0.0 }
 0x152   :  { %v204_v41 = vmul.f32 %v200_v32, %v192_v37  ;;  %v231_v46 = vadd.f32 %v230_v44, %v229_v30 }
 0x153   :  { %v201_v42 = vmul.f32 %v197_v39, %v157_v29 }
 0x154   :  { %v208_v35 = vsel %vm35_vm5, %v204_v41, 0.0 }
 0x155   :  { %v205_v9 = vmul.f32 %v201_v42, %v193_v43  ;;  %v232_v47 = vsel %vm214_vm4, %v208_v35, 0.0 }
 0x156   :  { %v233_v48 = vadd.f32 %v232_v47, %v231_v46 }
 0x157   :  { %v209_v11 = vsel %vm36_vm0, %v205_v9, 0.0 }
 0x158   :  { %v234_v49 = vsel %vm214_vm4, %v209_v11, 0.0 }
 0x159   :  { %v235_v51 = vadd.f32 %v234_v49, %v233_v48  ;;  %v292_v57 = vpop.eup %291 }
 0x15b   :  { %v236_v52 = vrot.slane %v235_v51, 4 }
 0x15d   :  { %v237_v53 = vadd.f32 %v236_v52, %v235_v51 }
 0x15f   :  { %v238_v54 = vrot.slane %v237_v53, 2 }
 0x161   :  { %v239_v55 = vadd.f32 %v238_v54, %v237_v53 }
 0x163   :  { %v240_v16 = vrot.slane %v239_v55, 1 }
 0x165   :  { %v241_v56 = vadd.f32 %v240_v16, %v239_v55 }
 0x167   :  { %v242_v58 = vsub.f32 0.0, %v241_v56 }
 0x169   :  { %v244_v59 = vmul.f32 %v292_v57, %v242_v58 }
 0x16b   :  { %246 = vst.msk [vmem:[#allocation2] sm:$0x1] %vm245_vm6, %v244_v59 }
 0x16c   :  { %304 = shalt.err (!%p301_p4)
}
 0x16d   :  { %s305_s12 = scalar_lea.hbm %s488_s3, 16 }
 0x16e   :  { %p306_p5 = scmp.ne.s32.totalorder %s488_s3, %s305_s12  ;;  %p309_p6 = scmp.lt.u32.totalorder %s305_s12, %s488_s3 }
 0x170   :  { %p311_p7 = pnand %p309_p6, %p306_p5 }
 0x172   :  { %314 = shalt.err (!%p311_p7)
}
 0x173   :  { %256 = dma.vmem_to_hbm [thread:$0]  %s254_s2, 16, %s488_s3, [#allocation3]  }
 0x174   :  { %315 = dma.done.wait [#allocation3], 16  }
 0x175   :  { %316 = vsyncadd [#allocation3], 4294967280 }
 0x176   :  { %260 = vsyncpa [#allocation3], 1 }

</bundles_post_ra>
